<compile_context>
chip_gen: v6e
topology: v6e:2x2x1
jax: 0.10.0
libtpu: 0.0.40
codegen_flags: <defaults>
</compile_context>

<pallas_src>
import functools

import jax
import jax.numpy as jnp
from jax.experimental import pallas as pl
from jax.experimental.pallas import tpu as pltpu

_LANE = 128
_NEG_BIG = -1e30          # baked softmax mask for padded b4 lanes


def _round_up(n: int, m: int) -> int:
    return ((n + m - 1) // m) * m


# ---------------------------------------------------------------------------
# Kernel
# ---------------------------------------------------------------------------
def _classifier_kernel(x_ref, w1_ref, b1_ref, w2_ref, b2_ref,
                       w3_ref, b3_ref, w4_ref, b4_ref, o_ref,
                       *, output_sz: int):
    # bf16 cast in-kernel (VPU, hidden under the MXU) instead of a separate
    # XLA pass over x in HBM.
    x = x_ref[...].astype(jnp.bfloat16)

    h = jnp.dot(x, w1_ref[...], preferred_element_type=jnp.float32) + b1_ref[...]
    h = jnp.maximum(h, 0.0).astype(jnp.bfloat16)

    h = jnp.dot(h, w2_ref[...], preferred_element_type=jnp.float32) + b2_ref[...]
    h = jnp.maximum(h, 0.0).astype(jnp.bfloat16)

    h = jnp.dot(h, w3_ref[...], preferred_element_type=jnp.float32) + b3_ref[...]
    h = jnp.maximum(h, 0.0).astype(jnp.bfloat16)

    z = jnp.dot(h, w4_ref[...], preferred_element_type=jnp.float32) + b4_ref[...]

    if output_sz == 1:
        # Pack the per-row scalar onto the lane axis: one lane-dense (1, tb)
        # bf16 store instead of a 128-lane padded row per sample.
        z0 = jnp.transpose(z)[0:1, :]                              # (1, tb), XLU
        o_ref[...] = pl.reciprocal(1.0 + jnp.exp(-z0), approx=True).astype(o_ref.dtype)
    else:
        # Padded b4 lanes carry -1e30 (padded w4 columns are 0) so no
        # in-kernel mask is needed: they exp() to exactly 0.
        z = z - jnp.max(z, axis=-1, keepdims=True)
        e = jnp.exp(z)
        inv = pl.reciprocal(jnp.sum(e, axis=-1, keepdims=True), approx=True)
        o_ref[...] = (e * inv).astype(o_ref.dtype)


# ---------------------------------------------------------------------------
# One-time parameter preparation (NOT in the per-call hot path)
# ---------------------------------------------------------------------------
def prepare_params(params, *, output_sz: int):
    """Lane-pad feature dims to multiples of 128 and cast weights to bf16.

    params: dict of (in, out) f32 weights 'w1'..'w4' and (1, out) biases
    'b1'..'b4' (already stored pre-transposed relative to torch.nn.Linear).
    """
    w1, w2, w3, w4 = params["w1"], params["w2"], params["w3"], params["w4"]
    input_sz = w1.shape[0]
    d1p = _round_up(w1.shape[1], _LANE)
    d2p = _round_up(w2.shape[1], _LANE)
    d3p = _round_up(w3.shape[1], _LANE)
    dop = _round_up(output_sz, _LANE)

    def pad_w(w, rows, cols):
        out = jnp.zeros((rows, cols), jnp.bfloat16)
        return out.at[:w.shape[0], :w.shape[1]].set(w.astype(jnp.bfloat16))

    def pad_b(b, cols, fill=0.0):
        b = jnp.asarray(b, jnp.float32).reshape(1, -1)
        out = jnp.full((1, cols), fill, jnp.float32)
        return out.at[:, :b.shape[1]].set(b)

    b4_fill = 0.0 if output_sz == 1 else _NEG_BIG      # bake softmax mask into b4
    return {
        "w1": pad_w(w1, input_sz, d1p), "b1": pad_b(params["b1"], d1p),
        "w2": pad_w(w2, d1p, d2p),      "b2": pad_b(params["b2"], d2p),
        "w3": pad_w(w3, d2p, d3p),      "b3": pad_b(params["b3"], d3p),
        "w4": pad_w(w4, d3p, dop),      "b4": pad_b(params["b4"], dop, b4_fill),
    }


# ---------------------------------------------------------------------------
# Generation-aware tiling / VMEM helpers
# ---------------------------------------------------------------------------
def _vmem_capacity_bytes() -> int:
    try:
        return int(pltpu.get_tpu_info().vmem_capacity_bytes)
    except Exception:
        return 64 * 2**20          # conservative (v7x per-TensorCore VMEM)


def _num_tensorcores() -> int:
    try:
        kind = jax.devices()[0].device_kind.lower()
        return 2 if ("v7" in kind or "7x" in kind) else 1
    except Exception:
        return 1


def _auto_batch_tile(B: int, vmem_cap: int, n_cores: int) -> int:
    if B <= _LANE:
        return B                                   # one full-extent tile
    big = 512 if vmem_cap > 96 * 2**20 else 256    # v5e/v6e vs v7x
    if n_cores > 1:
        # >= 1 grid step per TensorCore so the megacore split has work.
        big = min(big, _round_up(pl.cdiv(B, n_cores), _LANE))
    tb = min(big, _round_up(B, _LANE))
    return B if tb >= B else tb


def _sanitize_batch_tile(tb: int, B: int) -> int:
    # A legal tile is either the full batch or a multiple of 128 (covers both
    # the x sublane dim and the lane-packed sigmoid output).
    if tb >= B:
        return B
    tb = _round_up(tb, _LANE)
    return B if tb >= B else tb


# ---------------------------------------------------------------------------
# Forward pass
# ---------------------------------------------------------------------------
def classifier_forward(x, prepared, *, output_sz: int, batch_tile: int | None = None):
    """x: (B, input_sz) float32.  prepared: output of prepare_params().
    Returns (B, output_sz) float32."""
    B, input_sz = x.shape
    w1, b1 = prepared["w1"], prepared["b1"]
    w2, b2 = prepared["w2"], prepared["b2"]
    w3, b3 = prepared["w3"], prepared["b3"]
    w4, b4 = prepared["w4"], prepared["b4"]
    assert w1.shape[0] == input_sz, "x feature dim does not match prepared params"
    d1p, d2p, d3p, dop = w1.shape[1], w2.shape[1], w3.shape[1], w4.shape[1]

    vmem_cap = _vmem_capacity_bytes()
    n_cores = _num_tensorcores()
    tb = (_auto_batch_tile(B, vmem_cap, n_cores) if batch_tile is None
          else _sanitize_batch_tile(batch_tile, B))

    weight_bytes = sum(int(a.size) * a.dtype.itemsize
                       for a in (w1, b1, w2, b2, w3, b3, w4, b4))

    def footprint(t, weight_mult):
        out_tile = t * 2 if output_sz == 1 else t * dop * 2   # bf16 output tile
        stream = 2 * (t * input_sz * 4 + out_tile)            # double-buffered streams
        act = t * (d1p + d2p + d3p + dop) * 6                 # f32 acc + bf16 copies
        return weight_mult * weight_bytes + stream + act + (4 << 20)

    cap = int(0.8 * vmem_cap)        # stay below physical VMEM (v7x: 64 MiB/TC)
    while tb > _LANE and footprint(tb, 1) > cap:
        tb = max(_LANE, ((tb // 2) // _LANE) * _LANE)
    grid = (pl.cdiv(B, tb),)

    if output_sz == 1:
        out_shape = jax.ShapeDtypeStruct((1, B), jnp.bfloat16)
        out_spec = pl.BlockSpec((1, tb), lambda i: (0, i))     # lane-packed scalars
    else:
        out_shape = jax.ShapeDtypeStruct((B, dop), jnp.bfloat16)
        out_spec = pl.BlockSpec((tb, dop), lambda i: (i, 0))

    kernel = functools.partial(_classifier_kernel, output_sz=output_sz)

    def run(single_buffer: bool):
        if single_buffer:
            const = lambda a: pl.BlockSpec(a.shape, lambda i: (0, 0),
                                           pipeline_mode=pl.Buffered(1))
            wmult = 1
        else:
            const = lambda a: pl.BlockSpec(a.shape, lambda i: (0, 0))
            wmult = 2
        vmem_limit = int(max(16 << 20, min(cap, footprint(tb, wmult))))
        return pl.pallas_call(
            kernel,
            out_shape=out_shape,
            grid_spec=pltpu.PrefetchScalarGridSpec(
                num_scalar_prefetch=0,
                grid=grid,
                in_specs=[pl.BlockSpec((tb, input_sz), lambda i: (i, 0)),
                          const(w1), const(b1), const(w2), const(b2),
                          const(w3), const(b3), const(w4), const(b4)],
                out_specs=out_spec),
            compiler_params=pltpu.CompilerParams(
                dimension_semantics=("parallel",),
                vmem_limit_bytes=vmem_limit),
        )(x, w1, b1, w2, b2, w3, b3, w4, b4)

    try:
        out = run(True)            # single-buffered resident weights
    except (TypeError, ValueError, NotImplementedError, pltpu.LoweringException):
        # Narrow fallback (lowering-type failures only): default double-buffered
        # weight blocks.  Genuine runtime errors are NOT masked.
        out = run(False)

    if output_sz == 1:
        return out.reshape(B, 1).astype(jnp.float32)
    return out[:, :output_sz].astype(jnp.float32)


# ---------------------------------------------------------------------------
# Reference + init (for the self-test)
# ---------------------------------------------------------------------------
def init_params(key, input_sz, d_model, output_sz):
    """Deterministic init matching the nn.Linear shapes (stored pre-transposed)."""
    dims = [(input_sz, d_model),
            (d_model, d_model // 2),
            (d_model // 2, d_model // 4),
            (d_model // 4, output_sz)]
    params = {}
    for idx, (fan_in, fan_out) in enumerate(dims, start=1):
        key, kw, kb = jax.random.split(key, 3)
        bound = 1.0 / jnp.sqrt(fan_in)
        params[f"w{idx}"] = jax.random.uniform(
            kw, (fan_in, fan_out), jnp.float32, -bound, bound)
        params[f"b{idx}"] = jax.random.uniform(
            kb, (1, fan_out), jnp.float32, -bound, bound)
    return params


def reference_forward(x, params, output_sz):
    h = jnp.maximum(x @ params["w1"] + params["b1"], 0.0)
    h = jnp.maximum(h @ params["w2"] + params["b2"], 0.0)
    h = jnp.maximum(h @ params["w3"] + params["b3"], 0.0)
    z = h @ params["w4"] + params["b4"]
    if output_sz == 1:
        return jax.nn.sigmoid(z)
    return jax.nn.softmax(z, axis=1)


if __name__ == "__main__":
    input_sz, d_model = 32, 32          # d_model % 4 == 0

    key = jax.random.PRNGKey(0)
    key, kx = jax.random.split(key)

    # --- softmax head, odd small batch (single full-extent tile) ---
    B = 20
    x = jax.random.normal(kx, (B, input_sz), jnp.float32)
    params4 = init_params(key, input_sz, d_model, 4)
    prep4 = prepare_params(params4, output_sz=4)          # one-time weight prep
    out = jax.block_until_ready(classifier_forward(x, prep4, output_sz=4))
    ref = reference_forward(x, params4, 4)
    assert out.shape == (B, 4)
    assert jnp.allclose(out, ref, atol=3e-2, rtol=3e-2), "mismatch (softmax, B=20)"

    # --- sigmoid head, same batch (lane-packed scalar output) ---
    params1 = init_params(jax.random.PRNGKey(1), input_sz, d_model, 1)
    prep1 = prepare_params(params1, output_sz=1)
    out1 = jax.block_until_ready(classifier_forward(x, prep1, output_sz=1))
    ref1 = reference_forward(x, params1, 1)
    assert out1.shape == (B, 1)
    assert jnp.allclose(out1, ref1, atol=3e-2, rtol=3e-2), "mismatch (sigmoid, B=20)"

    # --- multi-step grid + partial last tile (explicit 128-row tiles) ---
    B2 = 300
    x2 = jax.random.normal(jax.random.PRNGKey(2), (B2, input_sz), jnp.float32)
    out2 = jax.block_until_ready(
        classifier_forward(x2, prep4, output_sz=4, batch_tile=128))
    assert out2.shape == (B2, 4)
    assert jnp.allclose(out2, reference_forward(x2, params4, 4),
                        atol=3e-2, rtol=3e-2), "mismatch (softmax, B=300)"
    out3 = jax.block_until_ready(
        classifier_forward(x2, prep1, output_sz=1, batch_tile=128))
    assert out3.shape == (B2, 1)
    assert jnp.allclose(out3, reference_forward(x2, params1, 1),
                        atol=3e-2, rtol=3e-2), "mismatch (sigmoid, B=300)"

    print("KERNEL_OK")
</pallas_src>

<mosaic_0001>
module attributes {stable_mosaic.version = 11 : i64} {
  func.func @_classifier_kernel(%arg0: i32, %arg1: memref<20x32xf32, #tpu.memory_space<vmem>>, %arg2: memref<32x128xbf16, #tpu.memory_space<vmem>>, %arg3: memref<1x128xf32, #tpu.memory_space<vmem>>, %arg4: memref<128x128xbf16, #tpu.memory_space<vmem>>, %arg5: memref<1x128xf32, #tpu.memory_space<vmem>>, %arg6: memref<128x128xbf16, #tpu.memory_space<vmem>>, %arg7: memref<1x128xf32, #tpu.memory_space<vmem>>, %arg8: memref<128x128xbf16, #tpu.memory_space<vmem>>, %arg9: memref<1x128xf32, #tpu.memory_space<vmem>>, %arg10: memref<20x128xbf16, #tpu.memory_space<vmem>>) attributes {dimension_semantics = [#tpu.dimension_semantics<parallel>], iteration_bounds = array<i64: 1>, scalar_prefetch = 0 : i64, scratch_operands = 0 : i64, tpu.core_type = #tpu.core_type<tc>, window_params = [{transform_indices = @transform_0, window_bounds = array<i64: 20, 32>}, {pipeline_mode = #tpu.pipeline_mode<synchronous>, transform_indices = @transform_1, window_bounds = array<i64: 32, 128>}, {pipeline_mode = #tpu.pipeline_mode<synchronous>, transform_indices = @transform_2, window_bounds = array<i64: 1, 128>}, {pipeline_mode = #tpu.pipeline_mode<synchronous>, transform_indices = @transform_3, window_bounds = array<i64: 128, 128>}, {pipeline_mode = #tpu.pipeline_mode<synchronous>, transform_indices = @transform_4, window_bounds = array<i64: 1, 128>}, {pipeline_mode = #tpu.pipeline_mode<synchronous>, transform_indices = @transform_5, window_bounds = array<i64: 128, 128>}, {pipeline_mode = #tpu.pipeline_mode<synchronous>, transform_indices = @transform_6, window_bounds = array<i64: 1, 128>}, {pipeline_mode = #tpu.pipeline_mode<synchronous>, transform_indices = @transform_7, window_bounds = array<i64: 128, 128>}, {pipeline_mode = #tpu.pipeline_mode<synchronous>, transform_indices = @transform_8, window_bounds = array<i64: 1, 128>}, {transform_indices = @transform_9, window_bounds = array<i64: 20, 128>}]} {
    %c0 = arith.constant 0 : index
    %c0_0 = arith.constant 0 : index
    %0 = vector.load %arg1[%c0, %c0_0] : memref<20x32xf32, #tpu.memory_space<vmem>>, vector<20x32xf32>
    %1 = arith.truncf %0 : vector<20x32xf32> to vector<20x32xbf16>
    %c0_1 = arith.constant 0 : index
    %c0_2 = arith.constant 0 : index
    %2 = vector.load %arg2[%c0_1, %c0_2] : memref<32x128xbf16, #tpu.memory_space<vmem>>, vector<32x128xbf16>
    %cst = arith.constant dense<0.000000e+00> : vector<20x128xf32>
    %3 = tpu.matmul %1, %2, %cst {dimension_numbers = #tpu.dot_dimension_numbers<[1], [0], [0], [1], [0, 0, 1, 1], [], []>} : vector<20x32xbf16>, vector<32x128xbf16>, vector<20x128xf32> -> vector<20x128xf32>
    %c0_3 = arith.constant 0 : index
    %c0_4 = arith.constant 0 : index
    %4 = vector.load %arg3[%c0_3, %c0_4] : memref<1x128xf32, #tpu.memory_space<vmem>>, vector<1x128xf32>
    %5 = vector.broadcast %4 : vector<1x128xf32> to vector<20x128xf32>
    %6 = arith.addf %3, %5 : vector<20x128xf32>
    %cst_5 = arith.constant 0.000000e+00 : f32
    %7 = vector.broadcast %cst_5 : f32 to vector<20x128xf32>
    %8 = arith.maximumf %6, %7 : vector<20x128xf32>
    %9 = arith.truncf %8 : vector<20x128xf32> to vector<20x128xbf16>
    %c0_6 = arith.constant 0 : index
    %c0_7 = arith.constant 0 : index
    %10 = vector.load %arg4[%c0_6, %c0_7] : memref<128x128xbf16, #tpu.memory_space<vmem>>, vector<128x128xbf16>
    %cst_8 = arith.constant dense<0.000000e+00> : vector<20x128xf32>
    %11 = tpu.matmul %9, %10, %cst_8 {dimension_numbers = #tpu.dot_dimension_numbers<[1], [0], [0], [1], [0, 0, 1, 1], [], []>} : vector<20x128xbf16>, vector<128x128xbf16>, vector<20x128xf32> -> vector<20x128xf32>
    %c0_9 = arith.constant 0 : index
    %c0_10 = arith.constant 0 : index
    %12 = vector.load %arg5[%c0_9, %c0_10] : memref<1x128xf32, #tpu.memory_space<vmem>>, vector<1x128xf32>
    %13 = vector.broadcast %12 : vector<1x128xf32> to vector<20x128xf32>
    %14 = arith.addf %11, %13 : vector<20x128xf32>
    %cst_11 = arith.constant 0.000000e+00 : f32
    %15 = vector.broadcast %cst_11 : f32 to vector<20x128xf32>
    %16 = arith.maximumf %14, %15 : vector<20x128xf32>
    %17 = arith.truncf %16 : vector<20x128xf32> to vector<20x128xbf16>
    %c0_12 = arith.constant 0 : index
    %c0_13 = arith.constant 0 : index
    %18 = vector.load %arg6[%c0_12, %c0_13] : memref<128x128xbf16, #tpu.memory_space<vmem>>, vector<128x128xbf16>
    %cst_14 = arith.constant dense<0.000000e+00> : vector<20x128xf32>
    %19 = tpu.matmul %17, %18, %cst_14 {dimension_numbers = #tpu.dot_dimension_numbers<[1], [0], [0], [1], [0, 0, 1, 1], [], []>} : vector<20x128xbf16>, vector<128x128xbf16>, vector<20x128xf32> -> vector<20x128xf32>
    %c0_15 = arith.constant 0 : index
    %c0_16 = arith.constant 0 : index
    %20 = vector.load %arg7[%c0_15, %c0_16] : memref<1x128xf32, #tpu.memory_space<vmem>>, vector<1x128xf32>
    %21 = vector.broadcast %20 : vector<1x128xf32> to vector<20x128xf32>
    %22 = arith.addf %19, %21 : vector<20x128xf32>
    %cst_17 = arith.constant 0.000000e+00 : f32
    %23 = vector.broadcast %cst_17 : f32 to vector<20x128xf32>
    %24 = arith.maximumf %22, %23 : vector<20x128xf32>
    %25 = arith.truncf %24 : vector<20x128xf32> to vector<20x128xbf16>
    %c0_18 = arith.constant 0 : index
    %c0_19 = arith.constant 0 : index
    %26 = vector.load %arg8[%c0_18, %c0_19] : memref<128x128xbf16, #tpu.memory_space<vmem>>, vector<128x128xbf16>
    %cst_20 = arith.constant dense<0.000000e+00> : vector<20x128xf32>
    %27 = tpu.matmul %25, %26, %cst_20 {dimension_numbers = #tpu.dot_dimension_numbers<[1], [0], [0], [1], [0, 0, 1, 1], [], []>} : vector<20x128xbf16>, vector<128x128xbf16>, vector<20x128xf32> -> vector<20x128xf32>
    %c0_21 = arith.constant 0 : index
    %c0_22 = arith.constant 0 : index
    %28 = vector.load %arg9[%c0_21, %c0_22] : memref<1x128xf32, #tpu.memory_space<vmem>>, vector<1x128xf32>
    %29 = vector.broadcast %28 : vector<1x128xf32> to vector<20x128xf32>
    %30 = arith.addf %27, %29 : vector<20x128xf32>
    %cst_23 = arith.constant dense<0xFF800000> : vector<20xf32>
    %31 = vector.multi_reduction <maximumf>, %30, %cst_23 [1] : vector<20x128xf32> to vector<20xf32>
    %32 = vector.shape_cast %31 : vector<20xf32> to vector<20x1xf32>
    %33 = vector.broadcast %32 : vector<20x1xf32> to vector<20x128xf32>
    %34 = arith.subf %30, %33 : vector<20x128xf32>
    %35 = math.exp %34 : vector<20x128xf32>
    %cst_24 = arith.constant dense<0.000000e+00> : vector<20xf32>
    %36 = vector.multi_reduction <add>, %35, %cst_24 [1] : vector<20x128xf32> to vector<20xf32>
    %37 = vector.shape_cast %36 : vector<20xf32> to vector<20x1xf32>
    %38 = tpu.reciprocal %37 {approx = true} : vector<20x1xf32> -> vector<20x1xf32>
    %39 = vector.broadcast %38 : vector<20x1xf32> to vector<20x128xf32>
    %40 = arith.mulf %35, %39 : vector<20x128xf32>
    %41 = arith.truncf %40 : vector<20x128xf32> to vector<20x128xbf16>
    %c0_25 = arith.constant 0 : index
    %c0_26 = arith.constant 0 : index
    %42 = vector.load %arg10[%c0_25, %c0_26] : memref<20x128xbf16, #tpu.memory_space<vmem>>, vector<20x128xbf16>
    tpu.vector_store %arg10[%c0_25, %c0_26], %41 {strides = array<i32>} : memref<20x128xbf16, #tpu.memory_space<vmem>>, vector<20x128xbf16>,
    return
  }
  func.func @transform_0(%arg0: i32) -> (i32, i32) {
    %c0_i32 = arith.constant 0 : i32
    %c0_i32_0 = arith.constant 0 : i32
    return %arg0, %c0_i32 : i32, i32
  }
  func.func @transform_1(%arg0: i32) -> (i32, i32) {
    %c0_i32 = arith.constant 0 : i32
    %c0_i32_0 = arith.constant 0 : i32
    %c0_i32_1 = arith.constant 0 : i32
    return %c0_i32, %c0_i32_0 : i32, i32
  }
  func.func @transform_2(%arg0: i32) -> (i32, i32) {
    %c0_i32 = arith.constant 0 : i32
    %c0_i32_0 = arith.constant 0 : i32
    %c0_i32_1 = arith.constant 0 : i32
    return %c0_i32, %c0_i32_0 : i32, i32
  }
  func.func @transform_3(%arg0: i32) -> (i32, i32) {
    %c0_i32 = arith.constant 0 : i32
    %c0_i32_0 = arith.constant 0 : i32
    %c0_i32_1 = arith.constant 0 : i32
    return %c0_i32, %c0_i32_0 : i32, i32
  }
  func.func @transform_4(%arg0: i32) -> (i32, i32) {
    %c0_i32 = arith.constant 0 : i32
    %c0_i32_0 = arith.constant 0 : i32
    %c0_i32_1 = arith.constant 0 : i32
    return %c0_i32, %c0_i32_0 : i32, i32
  }
  func.func @transform_5(%arg0: i32) -> (i32, i32) {
    %c0_i32 = arith.constant 0 : i32
    %c0_i32_0 = arith.constant 0 : i32
    %c0_i32_1 = arith.constant 0 : i32
    return %c0_i32, %c0_i32_0 : i32, i32
  }
  func.func @transform_6(%arg0: i32) -> (i32, i32) {
    %c0_i32 = arith.constant 0 : i32
    %c0_i32_0 = arith.constant 0 : i32
    %c0_i32_1 = arith.constant 0 : i32
    return %c0_i32, %c0_i32_0 : i32, i32
  }
  func.func @transform_7(%arg0: i32) -> (i32, i32) {
    %c0_i32 = arith.constant 0 : i32
    %c0_i32_0 = arith.constant 0 : i32
    %c0_i32_1 = arith.constant 0 : i32
    return %c0_i32, %c0_i32_0 : i32, i32
  }
  func.func @transform_8(%arg0: i32) -> (i32, i32) {
    %c0_i32 = arith.constant 0 : i32
    %c0_i32_0 = arith.constant 0 : i32
    %c0_i32_1 = arith.constant 0 : i32
    return %c0_i32, %c0_i32_0 : i32, i32
  }
  func.func @transform_9(%arg0: i32) -> (i32, i32) {
    %c0_i32 = arith.constant 0 : i32
    %c0_i32_0 = arith.constant 0 : i32
    return %arg0, %c0_i32 : i32, i32
  }
}

</mosaic_0001>

<bundles_post_ra>
// kernel: tpu_custom_call.1
= control target key start
LH: loop header
LB: loop body
LE: loop exit
PB: predicated region body
PF: predicated region fallthrough
CT: control target
= control target key end

     0   :  { %14 = vsyncpa [#allocation3], 0  ;;  %s1050_s0 = inlined_call_operand.hbm [shape: f32[20,32], index: 0, kind: input, shape index: {}]   ;;  %s1051_s1 = inlined_call_operand.hbm [shape: bf16[32,128], index: 1, kind: input, shape index: {}]   ;;  %s1052_s2 = inlined_call_operand.vmem [shape: f32[1,128], index: 2, kind: input, shape index: {}]   ;;  %s1053_s3 = inlined_call_operand.hbm [shape: bf16[128,128], index: 3, kind: input, shape index: {}]   ;;  %s1054_s4 = inlined_call_operand.vmem [shape: f32[1,128], index: 4, kind: input, shape index: {}]   ;;  %s1055_s5 = inlined_call_operand.hbm [shape: bf16[128,128], index: 5, kind: input, shape index: {}]   ;;  %s1056_s6 = inlined_call_operand.vmem [shape: f32[1,128], index: 6, kind: input, shape index: {}]   ;;  %s1057_s7 = inlined_call_operand.hbm [shape: bf16[128,128], index: 7, kind: input, shape index: {}]   ;;  %s1058_s8 = inlined_call_operand.vmem [shape: f32[1,128], index: 8, kind: input, shape index: {}]   ;;  %s1059_s9 = inlined_call_operand.hbm [shape: bf16[20,128], index: 9, kind: output, shape index: {}]  }
   0x1   :  { %15 = vsyncpa [#allocation6], 0 }
   0x2   :  { %16 = vsyncpa [#allocation9], 0 }
   0x3   :  { %17 = vsyncpa [#allocation4], 0  ;;  %s943_s30 = smov [#allocation5]  }
   0x4   :  { %s35_s10 = sshll.u32 %s943_s30, 4  ;;  %s36_s10 = int_to_ptr.vmem [resolvable:$true] %s35_s10 }
   0x5   :  { %s823_s11 = scalar_lea.vmem %s36_s10, 256  ;;  %p828_p1 = scmp.lt.s32.totalorder %s36_s10, %s36_s10 }
   0x6   :  { %p824_p0 = scmp.ne.s32.totalorder %s36_s10, %s823_s11  ;;  %p829_p2 = scmp.lt.s32.totalorder %s823_s11, %s823_s11 }
   0x8   :  { %p830_p3 = por %p829_p2, %p828_p1 }
   0xa   :  { %p831_p4 = pnand %p830_p3, %p824_p0 }
   0xc   :  { %834 = shalt.err (!%p831_p4)
}
   0xd   :  { %s944_s12 = smov 64   ;;  %s945_s13 = smov 4  }
   0xe   :  { %41 = dma.hbm_to_vmem [thread:$0]  %s1051_s1, 256, %s36_s10, [#allocation6], %s944_s12, %s944_s12, %s945_s13  }
   0xf   :  { %s946_s16 = smov [#allocation8]   ;;  %s947_s18 = smov [#allocation2]  }
  0x10   :  { %s63_s17 = sshll.u32 %s946_s16, 4  ;;  %s23_s19 = sshll.u32 %s947_s18, 4  ;;  %s64_s17 = int_to_ptr.vmem [resolvable:$true] %s63_s17  ;;  %s24_s19 = int_to_ptr.vmem [resolvable:$true] %s23_s19 }
  0x11   :  { %s843_s20 = scalar_lea.vmem %s64_s17, 1024  ;;  %p848_p6 = scmp.lt.s32.totalorder %s64_s17, %s64_s17 }
  0x12   :  { %p844_p5 = scmp.ne.s32.totalorder %s64_s17, %s843_s20  ;;  %p849_p7 = scmp.lt.s32.totalorder %s843_s20, %s843_s20 }
  0x14   :  { %p850_p8 = por %p849_p7, %p848_p6 }
  0x16   :  { %p851_p9 = pnand %p850_p8, %p844_p5 }
  0x18   :  { %854 = shalt.err (!%p851_p9)
}
  0x19   :  { %69 = dma.hbm_to_vmem [thread:$0]  %s1055_s5, 1024, %s64_s17, [#allocation9], %s944_s12, %s944_s12, %s945_s13  }
  0x1a   :  { %s863_s1 = scalar_lea.vmem %s24_s19, 384  ;;  %p868_p11 = scmp.lt.s32.totalorder %s24_s19, %s24_s19 }
  0x1b   :  { %p864_p10 = scmp.ne.s32.totalorder %s24_s19, %s863_s1  ;;  %p869_p12 = scmp.lt.s32.totalorder %s863_s1, %s863_s1 }
  0x1d   :  { %p870_p13 = por %p869_p12, %p868_p11 }
  0x1f   :  { %p871_p0 = pnand %p870_p13, %p864_p10 }
  0x21   :  { %874 = shalt.err (!%p871_p0)
}
  0x22   :  { %s948_s23 = smov 128   ;;  %s949_s24 = smov 8  }
  0x23   :  { %29 = dma.hbm_to_vmem [thread:$0]  %s1050_s0, 384, %s24_s19, [#allocation3], %s948_s23, %s948_s23, %s949_s24  }
  0x24   :  { %s950_s27 = smov [#allocation7]   ;;  %s951_s29 = smov [#allocation10]  }
  0x25   :  { %s49_s28 = sshll.u32 %s950_s27, 4  ;;  %s77_s30 = sshll.u32 %s951_s29, 4  ;;  %s50_s28 = int_to_ptr.vmem [resolvable:$true] %s49_s28  ;;  %s78_s30 = int_to_ptr.vmem [resolvable:$true] %s77_s30 }
  0x26   :  { %s883_s5 = scalar_lea.vmem %s50_s28, 1024  ;;  %p888_p2 = scmp.lt.s32.totalorder %s50_s28, %s50_s28 }
  0x27   :  { %p884_p1 = scmp.ne.s32.totalorder %s50_s28, %s883_s5  ;;  %p889_p3 = scmp.lt.s32.totalorder %s883_s5, %s883_s5 }
  0x29   :  { %p890_p4 = por %p889_p3, %p888_p2 }
  0x2b   :  { %p891_p5 = pnand %p890_p4, %p884_p1 }
  0x2d   :  { %894 = shalt.err (!%p891_p5)
}
  0x2e   :  { %55 = dma.hbm_to_vmem [thread:$0]  %s1053_s3, 1024, %s50_s28, [#allocation6], %s944_s12, %s944_s12, %s945_s13  }
  0x2f   :  { %s903_s0 = scalar_lea.vmem %s78_s30, 1024  ;;  %p908_p7 = scmp.lt.s32.totalorder %s78_s30, %s78_s30 }
  0x30   :  { %p904_p6 = scmp.ne.s32.totalorder %s78_s30, %s903_s0  ;;  %p909_p8 = scmp.lt.s32.totalorder %s903_s0, %s903_s0 }
  0x32   :  { %p910_p9 = por %p909_p8, %p908_p7 }
  0x34   :  { %p911_p10 = pnand %p910_p9, %p904_p6 }
  0x36   :  { %914 = shalt.err (!%p911_p10)
}
  0x37   :  { %83 = dma.hbm_to_vmem [thread:$0]  %s1057_s7, 1024, %s78_s30, [#allocation9], %s944_s12, %s944_s12, %s945_s13  }
  0x38   :  { %935 = dma.done.wait [#allocation3], 384  }
  0x39   :  { %936 = vsyncadd [#allocation3], 4294966912 }
  0x3a   :  { %937 = dma.done.wait [#allocation6], 1280  }
  0x3b   :  { %938 = vsyncadd [#allocation6], 4294966016 }
  0x3c   :  { %939 = dma.done.wait [#allocation9], 2048  }
  0x3d   :  { %940 = vsyncadd [#allocation9], 4294965248  ;;  %v777_v0 = vld [vmem:[#allocation5 + $0x8] sm:$0xff]   ;;  %v778_v1 = vld [vmem:[#allocation5] sm:$0xff]   ;;  %vm130_vm0 = vcmask 261120   ;;  %vm561_vm1 = vcmask 1043456  }
  0x3e   :  { %699 = vmatprep.subr.bf16.mxu0 %v777_v0  ;;  %v102_v2 = vld [vmem:[#allocation2] sm:$0xff]  ;;  %v103_v3 = vld [vmem:[#allocation2 + $0x8] sm:$0xff]  ;;  %v104_v4 = vld [vmem:[#allocation2 + $0x10] sm:$0xf] }
  0x3f   :  { %700 = vmatpush3.bf16.msra.mxu0 %v777_v0  ;;  %v105_v5 = vpack.c.bf16 %v103_v3, %v102_v2  ;;  %v779_v6 = vld [vmem:[#allocation7 + $0x38] sm:$0xff]   ;;  %v780_v7 = vld [vmem:[#allocation7 + $0x30] sm:$0xff]   ;;  %v106_v8 = vpack.c.bf16 %v104_v4, %v104_v4  ;;  %v781_v9 = vld [vmem:[#allocation7 + $0x28] sm:$0xff]  }
  0x40   :  { %701 = vmatprep.subr.bf16.mxu0 %v778_v1  ;;  %707 = vmatprep.subr.bf16.mxu1 %v779_v6  ;;  %v782_v10 = vld [vmem:[#allocation7 + $0x20] sm:$0xff]   ;;  %v783_v11 = vld [vmem:[#allocation7 + $0x18] sm:$0xff]   ;;  %v784_v12 = vld [vmem:[#allocation7 + $0x10] sm:$0xff]  }
  0x41   :  { %703 = vmatprep.mubr.msk.bf16.mxu0 %vm130_vm0, %v105_v5  ;;  %708 = vmatpush3.bf16.msra.mxu1 %v779_v6  ;;  %v785_v13 = vld [vmem:[#allocation7 + $0x8] sm:$0xff]   ;;  %v786_v14 = vld [vmem:[#allocation7] sm:$0xff]   ;;  %v787_v15 = vld [vmem:[#allocation8 + $0x38] sm:$0xff]  }
  0x42   :  { %709 = vmatprep.subr.bf16.mxu1 %v780_v7  ;;  %v788_v16 = vld [vmem:[#allocation8 + $0x30] sm:$0xff]   ;;  %v789_v17 = vld [vmem:[#allocation8 + $0x28] sm:$0xff]   ;;  %v790_v18 = vld [vmem:[#allocation8 + $0x20] sm:$0xff]  }
  0x43   :  { %702 = vmatpush3.bf16.msra.mxu0 %v778_v1  ;;  %v791_v19 = vld [vmem:[#allocation8 + $0x18] sm:$0xff]   ;;  %v792_v33 = vld [vmem:[#allocation8 + $0x10] sm:$0xff]   ;;  %v793_v34 = vld [vmem:[#allocation8 + $0x8] sm:$0xff]  }
  0x44   :  { %727 = vmatprep.subr.bf16.mxu0 %v787_v15  ;;  %v622_v21 = vld [vmem:[%s1052_s2] ss:$0 sm:$0xff]  ;;  %v794_v35 = vld [vmem:[#allocation8] sm:$0xff]   ;;  %v796_v37 = vld [vmem:[#allocation10 + $0x30] sm:$0xff]  }
  0x45   :  { %710 = vmatpush3.bf16.msra.mxu1 %v780_v7  ;;  %v795_v36 = vld [vmem:[#allocation10 + $0x38] sm:$0xff]   ;;  %v797_v38 = vld [vmem:[#allocation10 + $0x28] sm:$0xff]   ;;  %v798_v39 = vld [vmem:[#allocation10 + $0x20] sm:$0xff]  }
  0x46   :  { %704 = vmatmul.mubr.msk.bf16.vlgmr.msra.gmra.mxu0 %vm130_vm0, %v106_v8  ;;  %711 = vmatprep.subr.bf16.mxu1 %v781_v9  ;;  %v799_v40 = vld [vmem:[#allocation10 + $0x18] sm:$0xff]   ;;  %v800_v54 = vld [vmem:[#allocation10 + $0x10] sm:$0xff]   ;;  %v801_v55 = vld [vmem:[#allocation10 + $0x8] sm:$0xff]  }
  0x47   :  { %728 = vmatpush3.bf16.msra.mxu0 %v787_v15  ;;  %v627_v42 = vld [vmem:[%s1054_s4] ss:$0 sm:$0xff]  ;;  %v802_v56 = vld [vmem:[#allocation10] sm:$0xff]  }
  0x48   :  { %729 = vmatprep.subr.bf16.mxu0 %v788_v16  ;;  %v636_v58 = vld [vmem:[%s1056_s6] ss:$0 sm:$0xff]  ;;  %s952_s6 = smov [#allocation11]  }
  0x49   :  { %712 = vmatpush3.bf16.msra.mxu1 %v781_v9  ;;  %v645_v6 = vld [vmem:[%s1058_s8] ss:$0 sm:$0xff]  ;;  %s608_s8 = sshll.u32 %s952_s6, 4  ;;  %s609_s8 = int_to_ptr.vmem [resolvable:$true] %s608_s8 }
  0x4a   :  { %713 = vmatprep.subr.bf16.mxu1 %v782_v10  ;;  %s915_s20 = scalar_lea.vmem %s609_s8, 192  ;;  %p920_p12 = scmp.lt.s32.totalorder %s609_s8, %s609_s8 }
  0x4b   :  { %730 = vmatpush3.bf16.msra.mxu0 %v788_v16  ;;  %p916_p11 = scmp.ne.s32.totalorder %s609_s8, %s915_s20  ;;  %p921_p13 = scmp.lt.s32.totalorder %s915_s20, %s915_s20 }
  0x4c   :  { %731 = vmatprep.subr.bf16.mxu0 %v789_v17 }
  0x4d   :  { %714 = vmatpush3.bf16.msra.mxu1 %v782_v10  ;;  %p922_p0 = por %p921_p13, %p920_p12 }
  0x4e   :  { %715 = vmatprep.subr.bf16.mxu1 %v783_v11 }
  0x4f   :  { %732 = vmatpush3.bf16.msra.mxu0 %v789_v17  ;;  %p923_p1 = pnand %p922_p0, %p916_p11 }
  0x50   :  { %733 = vmatprep.subr.bf16.mxu0 %v790_v18 }
  0x51   :  { %716 = vmatpush3.bf16.msra.mxu1 %v783_v11 }
  0x52   :  { %717 = vmatprep.subr.bf16.mxu1 %v784_v12 }
  0x53   :  { %734 = vmatpush3.bf16.msra.mxu0 %v790_v18 }
  0x54   :  { %735 = vmatprep.subr.bf16.mxu0 %v791_v19 }
  0x55   :  { %718 = vmatpush3.bf16.msra.mxu1 %v784_v12 }
  0x56   :  { %719 = vmatprep.subr.bf16.mxu1 %v785_v13 }
  0x57   :  { %736 = vmatpush3.bf16.msra.mxu0 %v791_v19 }
  0x58   :  { %737 = vmatprep.subr.bf16.mxu0 %v792_v33 }
  0x59   :  { %720 = vmatpush3.bf16.msra.mxu1 %v785_v13 }
  0x5a   :  { %721 = vmatprep.subr.bf16.mxu1 %v786_v14 }
  0x5b   :  { %738 = vmatpush3.bf16.msra.mxu0 %v792_v33 }
  0x5c   :  { %739 = vmatprep.subr.bf16.mxu0 %v793_v34 }
  0x5d   :  { %722 = vmatpush3.bf16.msra.mxu1 %v786_v14 }
  0x5e   :  { %747 = vmatprep.subr.bf16.mxu1 %v795_v36 }
  0x5f   :  { %740 = vmatpush3.bf16.msra.mxu0 %v793_v34 }
  0x60   :  { %741 = vmatprep.subr.bf16.mxu0 %v794_v35 }
  0x63   :  { %742 = vmatpush3.bf16.msra.mxu0 %v794_v35 }
 0x106   :  { %v705_v20 = vpop.f32.mrf.mxu0 }
 0x107   :  { %v180_v23 = vadd.f32 %v705_v20, %v622_v21 }
 0x108   :  { %v171_v22 = vpop.f32.mrf.mxu0 }
 0x109   :  { %v172_v25 = vadd.f32 %v622_v21, %v171_v22  ;;  %v187_v28 = vmax.f32 %v180_v23, 0.0 }
 0x10a   :  { %v706_v24 = vpop.f32.mrf.mxu0 }
 0x10b   :  { %v185_v29 = vmax.f32 %v172_v25, 0.0  ;;  %v189_v32 = vpack.c.bf16 %v187_v28, %v187_v28 }
 0x10c   :  { %v174_v26 = vpop.f32.mrf.mxu0 }
 0x10d   :  { %v175_v27 = vadd.f32 %v622_v21, %v174_v26 }
 0x10f   :  { %v186_v30 = vmax.f32 %v175_v27, 0.0 }
 0x111   :  { %v188_v31 = vpack.c.bf16 %v186_v30, %v185_v29 }
 0x113   :  { %723 = vmatprep.mubr.bf16.mxu1 %v188_v31 }
 0x114   :  { %724 = vmatmul.mubr.bf16.vlgmr.msra.gmra.mxu1 %v189_v32 }
 0x115   :  { %748 = vmatpush3.bf16.msra.mxu1 %v795_v36 }
 0x116   :  { %749 = vmatprep.subr.bf16.mxu1 %v796_v37 }
 0x119   :  { %750 = vmatpush3.bf16.msra.mxu1 %v796_v37 }
 0x11a   :  { %751 = vmatprep.subr.bf16.mxu1 %v797_v38 }
 0x11d   :  { %752 = vmatpush3.bf16.msra.mxu1 %v797_v38 }
 0x11e   :  { %753 = vmatprep.subr.bf16.mxu1 %v798_v39 }
 0x121   :  { %754 = vmatpush3.bf16.msra.mxu1 %v798_v39 }
 0x122   :  { %755 = vmatprep.subr.bf16.mxu1 %v799_v40 }
 0x125   :  { %756 = vmatpush3.bf16.msra.mxu1 %v799_v40 }
 0x126   :  { %757 = vmatprep.subr.bf16.mxu1 %v800_v54 }
 0x129   :  { %758 = vmatpush3.bf16.msra.mxu1 %v800_v54 }
 0x12a   :  { %759 = vmatprep.subr.bf16.mxu1 %v801_v55 }
 0x12d   :  { %760 = vmatpush3.bf16.msra.mxu1 %v801_v55 }
 0x12e   :  { %761 = vmatprep.subr.bf16.mxu1 %v802_v56 }
 0x131   :  { %762 = vmatpush3.bf16.msra.mxu1 %v802_v56 }
 0x1d4   :  { %v725_v41 = vpop.f32.mrf.mxu1 }
 0x1d5   :  { %v304_v44 = vadd.f32 %v725_v41, %v627_v42 }
 0x1d6   :  { %v295_v43 = vpop.f32.mrf.mxu1 }
 0x1d7   :  { %v296_v46 = vadd.f32 %v627_v42, %v295_v43  ;;  %v311_v49 = vmax.f32 %v304_v44, 0.0 }
 0x1d8   :  { %v726_v45 = vpop.f32.mrf.mxu1 }
 0x1d9   :  { %v309_v50 = vmax.f32 %v296_v46, 0.0  ;;  %v313_v53 = vpack.c.bf16 %v311_v49, %v311_v49 }
 0x1da   :  { %v298_v47 = vpop.f32.mrf.mxu1 }
 0x1db   :  { %v299_v48 = vadd.f32 %v627_v42, %v298_v47 }
 0x1dd   :  { %v310_v51 = vmax.f32 %v299_v48, 0.0 }
 0x1df   :  { %v312_v52 = vpack.c.bf16 %v310_v51, %v309_v50 }
 0x1e1   :  { %743 = vmatprep.mubr.bf16.mxu0 %v312_v52 }
 0x1e2   :  { %744 = vmatmul.mubr.bf16.vlgmr.msra.gmra.mxu0 %v313_v53 }
 0x2a2   :  { %v745_v57 = vpop.f32.mrf.mxu0 }
 0x2a3   :  { %v428_v60 = vadd.f32 %v745_v57, %v636_v58 }
 0x2a4   :  { %v419_v59 = vpop.f32.mrf.mxu0 }
 0x2a5   :  { %v420_v62 = vadd.f32 %v636_v58, %v419_v59  ;;  %v435_v1 = vmax.f32 %v428_v60, 0.0 }
 0x2a6   :  { %v746_v61 = vpop.f32.mrf.mxu0 }
 0x2a7   :  { %v433_v2 = vmax.f32 %v420_v62, 0.0  ;;  %v437_v5 = vpack.c.bf16 %v435_v1, %v435_v1 }
 0x2a8   :  { %v422_v63 = vpop.f32.mrf.mxu0 }
 0x2a9   :  { %v423_v0 = vadd.f32 %v636_v58, %v422_v63 }
 0x2ab   :  { %v434_v3 = vmax.f32 %v423_v0, 0.0 }
 0x2ad   :  { %v436_v4 = vpack.c.bf16 %v434_v3, %v433_v2 }
 0x2af   :  { %763 = vmatprep.mubr.bf16.mxu1 %v436_v4 }
 0x2b0   :  { %764 = vmatmul.mubr.bf16.vlgmr.msra.gmra.mxu1 %v437_v5 }
 0x370   :  { %v765_v7 = vpop.f32.mrf.mxu1 }
 0x371   :  { %v552_v8 = vadd.f32 %v765_v7, %v645_v6 }
 0x372   :  { %v543_v9 = vpop.f32.mrf.mxu1 }
 0x373   :  { %v562_v10 = vsel %vm561_vm1, %v552_v8, -inf  ;;  %v544_v12 = vadd.f32 %v645_v6, %v543_v9 }
 0x374   :  { %563 = vmax.xlane.f32.xlu0 %v562_v10  ;;  %v766_v11 = vpop.f32.mrf.mxu1 }
 0x376   :  { %v546_v13 = vpop.f32.mrf.mxu1 }
 0x377   :  { %v547_v14 = vadd.f32 %v645_v6, %v546_v13 }
 0x378   :  { %557 = vmax.xlane.f32.xlu0 %v544_v12 }
 0x379   :  { %559 = vmax.xlane.f32.xlu1 %v547_v14 }
 0x3fd   :  { %v564_v15 = vpop.xlane.xlu0 %563 }
 0x3fe   :  { %v567_v16 = vsub.f32 %v552_v8, %v564_v15 }
 0x400   :  { %v572_v17 = vmul.f32 1.442695, %v567_v16 }
 0x401   :  { %v558_v18 = vpop.xlane.xlu0 %557 }
 0x402   :  { %v565_v19 = vsub.f32 %v544_v12, %v558_v18  ;;  %v560_v20 = vpop.xlane.xlu1 %559  ;;  %803 = vpow2.f32 %v572_v17 }
 0x403   :  { %v566_v21 = vsub.f32 %v547_v14, %v560_v20 }
 0x404   :  { %v568_v22 = vmul.f32 1.442695, %v565_v19 }
 0x405   :  { %v570_v23 = vmul.f32 1.442695, %v566_v21 }
 0x406   :  { %805 = vpow2.f32 %v568_v22 }
 0x407   :  { %807 = vpow2.f32 %v570_v23 }
 0x40f   :  { %v804_v24 = vpop.eup %803 }
 0x410   :  { %v578_v27 = vsel %vm561_vm1, %v804_v24, 0.0 }
 0x413   :  { %v806_v25 = vpop.eup %805 }
 0x414   :  { %v808_v26 = vpop.eup %807  ;;  %574 = vadd.xlane.f32.xlu1 %v806_v25 }
 0x415   :  { %576 = vadd.xlane.f32.xlu0 %v808_v26 }
 0x418   :  { %579 = vadd.xlane.f32.xlu1 %v578_v27 }
 0x49d   :  { %v575_v28 = vpop.xlane.xlu1 %574 }
 0x49e   :  { %809 = vrcp.f32 %v575_v28  ;;  %v577_v29 = vpop.xlane.xlu0 %576 }
 0x49f   :  { %811 = vrcp.f32 %v577_v29 }
 0x4a1   :  { %v580_v30 = vpop.xlane.xlu1 %579 }
 0x4a2   :  { %813 = vrcp.f32 %v580_v30 }
 0x4ab   :  { %v810_v31 = vpop.eup %809 }
 0x4ac   :  { %v812_v32 = vpop.eup %811  ;;  %v584_v33 = vmul.f32 %v810_v31, %v806_v25 }
 0x4ad   :  { %v585_v34 = vmul.f32 %v812_v32, %v808_v26 }
 0x4af   :  { %v814_v35 = vpop.eup %813  ;;  %v663_v36 = vpack.c.bf16 %v585_v34, %v584_v33 }
 0x4b0   :  { %v586_v37 = vmul.f32 %v814_v35, %v804_v24 }
 0x4b1   :  { %664 = vst [vmem:[#allocation11] sm:$0xff] %v663_v36  }
 0x4b2   :  { %v659_v38 = vpack.c.bf16 %v586_v37, %v586_v37 }
 0x4b4   :  { %602 = vst [vmem:[#allocation11 + $0x8] sm:$0x3] %v659_v38 }
 0x4b5   :  { %926 = shalt.err (!%p923_p1)
}
 0x4b6   :  { %614 = dma.vmem_to_hbm [thread:$0]  %s609_s8, 192, %s1059_s9, [#allocation4], %s944_s12, %s944_s12, %s945_s13  }
 0x4b7   :  { %941 = dma.done.wait [#allocation4], 192  }
 0x4b8   :  { %942 = vsyncadd [#allocation4], 4294967104 }
 0x4b9   :  { %618 = vsyncpa [#allocation3], 1 }
 0x4ba   :  { %619 = vsyncpa [#allocation6], 1 }
 0x4bb   :  { %620 = vsyncpa [#allocation9], 1 }
 0x4bc   :  { %621 = vsyncpa [#allocation4], 1 }

</bundles_post_ra>
